<compile_context>
chip_gen: v7x
topology: tpu7x:2x2x1
jax: 0.10.0
libtpu: 0.0.40
codegen_flags: <defaults>
</compile_context>

<pallas_src>
import functools

import jax
import jax.numpy as jnp
from jax.experimental import pallas as pl
from jax.experimental.pallas import tpu as pltpu


def focal_loss_kernel(x_ref, t_ref, o_ref, acc_ref, *, gamma, alpha_vec,
                      hw_total, total_rows, size_average):
    n = pl.program_id(0)           # image index
    j = pl.program_id(1)           # spatial tile index

    x = x_ref[0].astype(jnp.float32)     # (C, thw) logits tile, classes on sublanes
    t = t_ref[0]                          # (1, thw) int32 targets
    C, thw = x.shape

    @pl.when((n == 0) & (j == 0))
    def _():
        acc_ref[...] = jnp.zeros_like(acc_ref)
        o_ref[...] = jnp.zeros_like(o_ref)

    # log-softmax statistics over the class (sublane) axis
    m = jnp.max(x, axis=0, keepdims=True)                        # (1, thw)
    z = x - m                                                    # (C, thw)
    lse = jnp.log(jnp.sum(jnp.exp(z), axis=0, keepdims=True))    # (1, thw)

    # one-hot gather of the target class (no dynamic gather on TPU);
    # do NOT materialise the full log-softmax: gather z_t and subtract lse once.
    cls = jax.lax.broadcasted_iota(jnp.int32, (C, thw), 0)
    onehot = cls == t                                            # (C, thw) bool
    z_t = jnp.sum(jnp.where(onehot, z, 0.0), axis=0, keepdims=True)   # (1, thw)
    logpt = z_t - lse                                            # (1, thw)
    pt = jnp.exp(logpt)

    # alpha weighting: alpha is static module state, so gather alpha[target]
    # with a chain of scalar-constant selects (Python floats only -> no array
    # constant is captured by the kernel, no extra input stream needed).
    if alpha_vec is not None:
        at = jnp.zeros_like(pt)                                  # (1, thw)
        for ci, av in enumerate(alpha_vec):
            if av != 0.0:
                at = jnp.where(t == ci, jnp.float32(av), at)
        logpt = logpt * at

    # focal weight: specialise integer gamma (default 2) to a multiply chain
    one_minus_pt = 1.0 - pt
    if gamma == 0.0:
        w = jnp.ones_like(pt)
    elif float(gamma).is_integer() and 0 < gamma <= 8:
        w = one_minus_pt
        for _ in range(int(gamma) - 1):
            w = w * one_minus_pt
    else:
        w = one_minus_pt ** gamma
    loss = -w * logpt                                            # (1, thw)

    # mask padded spatial columns (only emitted when padding actually happened)
    if hw_total % thw != 0:
        col = j * thw + jax.lax.broadcasted_iota(jnp.int32, (1, thw), 1)
        loss = jnp.where(col < hw_total, loss, 0.0)

    # steady-state: vector add into the resident VMEM accumulator
    acc_ref[...] += loss

    # epilogue: single cross-lane reduce + mean/sum
    @pl.when((n == pl.num_programs(0) - 1) & (j == pl.num_programs(1) - 1))
    def _():
        total = jnp.sum(acc_ref[...], keepdims=True)             # (1, 1)
        if size_average:
            total = total / jnp.float32(total_rows)
        o_ref[...] = total


def focal_loss(x, target, *, gamma=2.0, alpha=None, size_average=True, thw=1024):
    """Pallas FocalLoss forward.

    x: (N, C, H, W) logits (f32 or bf16) or (M, C); target: integer labels.
    """
    if x.ndim > 2:
        N, C = x.shape[0], x.shape[1]
        x3 = x.reshape(N, C, -1)          # (N, C, H*W) — pure reshape, no transpose
    else:
        # 2-D (M, C) input: put classes on sublanes, rows on lanes.
        C = x.shape[1]
        x3 = x.T[None]                    # (1, C, M)
        N = 1
    HW = x3.shape[2]
    t3 = target.reshape(N, 1, HW).astype(jnp.int32)

    M = N * HW                            # rows contributing to the mean

    # Lane-axis tile: big (up to `thw`), multiple of 128, clamped to padded HW.
    thw = max(128, min(int(thw), pl.cdiv(HW, 128) * 128))
    HWp = pl.cdiv(HW, thw) * thw
    if HWp != HW:
        x3 = jnp.pad(x3, ((0, 0), (0, 0), (0, HWp - HW)))
        t3 = jnp.pad(t3, ((0, 0), (0, 0), (0, HWp - HW)))
    num_hw_tiles = HWp // thw

    # Alpha is static (module __init__ semantics): bake it as scalar constants.
    if alpha is None:
        alpha_vec = None
    else:
        if isinstance(alpha, (float, int)):
            a_vals = [float(alpha), 1.0 - float(alpha)]
        else:
            a_vals = [float(v) for v in alpha]
        # Classes beyond len(alpha) get weight 0 (PyTorch would index-error here).
        a_vals = (a_vals + [0.0] * C)[:C]
        alpha_vec = tuple(a_vals)

    kernel = functools.partial(
        focal_loss_kernel,
        gamma=float(gamma),
        alpha_vec=alpha_vec,
        hw_total=HW,
        total_rows=M,
        size_average=bool(size_average),
    )

    out = pl.pallas_call(
        kernel,
        out_shape=jax.ShapeDtypeStruct((1, 1), jnp.float32),
        grid_spec=pltpu.PrefetchScalarGridSpec(
            num_scalar_prefetch=0,
            grid=(N, num_hw_tiles),
            in_specs=[
                pl.BlockSpec((1, C, thw), lambda n, j: (n, 0, j)),   # logits tile
                pl.BlockSpec((1, 1, thw), lambda n, j: (n, 0, j)),   # target tile
            ],
            out_specs=pl.BlockSpec((1, 1), lambda n, j: (0, 0)),
            scratch_shapes=[pltpu.VMEM((1, thw), jnp.float32)],      # partial sums
        ),
        compiler_params=pltpu.CompilerParams(
            # Both axes feed one resident accumulator -> keep them sequential.
            # TODO(synk): for v7x dual-TC, split N into per-core partial outputs.
            dimension_semantics=("arbitrary", "arbitrary"),
            vmem_limit_bytes=32 * 1024 * 1024,
        ),
    )(x3, t3)
    return out[0, 0]


def focal_loss_ref(x, target, *, gamma=2.0, alpha=None, size_average=True):
    """Pure-JAX reference mirroring the PyTorch forward."""
    N, C = x.shape[0], x.shape[1]
    x2 = x.reshape(N, C, -1).transpose(0, 2, 1).reshape(-1, C).astype(jnp.float32)
    t = target.reshape(-1).astype(jnp.int32)
    logp = jax.nn.log_softmax(x2, axis=1)
    logpt = jnp.take_along_axis(logp, t[:, None], axis=1)[:, 0]
    pt = jnp.exp(logpt)
    if alpha is not None:
        if isinstance(alpha, (float, int)):
            a_vals = jnp.array([alpha, 1.0 - alpha], jnp.float32)
        else:
            a_vals = jnp.asarray(alpha, jnp.float32)
        logpt = logpt * a_vals[t]
    loss = -((1.0 - pt) ** gamma) * logpt
    return loss.mean() if size_average else loss.sum()


if __name__ == "__main__":
    key = jax.random.PRNGKey(0)
    kx, kt = jax.random.split(key)

    N, C, H, W = 2, 4, 16, 16
    x = jax.random.normal(kx, (N, C, H, W), dtype=jnp.float32)
    target = jax.random.randint(kt, (N, H, W), 0, C, dtype=jnp.int32)

    # no-alpha, mean (module defaults)
    out = focal_loss(x, target, gamma=2.0, alpha=None, size_average=True)
    out = jax.block_until_ready(out)
    ref = focal_loss_ref(x, target, gamma=2.0, alpha=None, size_average=True)
    assert jnp.allclose(out, ref, atol=1e-5, rtol=1e-5), (out, ref)

    # list-alpha, sum (exercises the alpha branch and size_average=False)
    alpha = [0.4, 0.3, 0.2, 0.1]
    out2 = focal_loss(x, target, gamma=2.0, alpha=alpha, size_average=False)
    out2 = jax.block_until_ready(out2)
    ref2 = focal_loss_ref(x, target, gamma=2.0, alpha=alpha, size_average=False)
    assert jnp.allclose(out2, ref2, atol=1e-4, rtol=1e-5), (out2, ref2)

    print("KERNEL_OK")
</pallas_src>

<mosaic_0001>
module attributes {stable_mosaic.version = 11 : i64} {
  func.func @focal_loss_kernel(%arg0: i32, %arg1: i32, %arg2: memref<1x4x256xf32, #tpu.memory_space<vmem>>, %arg3: memref<1x1x256xi32, #tpu.memory_space<vmem>>, %arg4: memref<1x1xf32, #tpu.memory_space<vmem>>, %arg5: memref<1x256xf32, #tpu.memory_space<vmem>>) attributes {dimension_semantics = [#tpu.dimension_semantics<arbitrary>, #tpu.dimension_semantics<arbitrary>], iteration_bounds = array<i64: 2, 1>, scalar_prefetch = 0 : i64, scratch_operands = 1 : i64, tpu.core_type = #tpu.core_type<tc>, window_params = [{transform_indices = @transform_0, window_bounds = array<i64: 1, 4, 256>}, {transform_indices = @transform_1, window_bounds = array<i64: 1, 1, 256>}, {pipeline_mode = #tpu.pipeline_mode<synchronous>, transform_indices = @transform_2, window_bounds = array<i64: 1, 1>}]} {
    %c0 = arith.constant 0 : index
    %c0_0 = arith.constant 0 : index
    %c0_1 = arith.constant 0 : index
    %0 = vector.load %arg2[%c0, %c0_0, %c0_1] : memref<1x4x256xf32, #tpu.memory_space<vmem>>, vector<1x4x256xf32>
    %1 = vector.shape_cast %0 : vector<1x4x256xf32> to vector<4x256xf32>
    %c0_2 = arith.constant 0 : index
    %c0_3 = arith.constant 0 : index
    %c0_4 = arith.constant 0 : index
    %2 = vector.load %arg3[%c0_2, %c0_3, %c0_4] : memref<1x1x256xi32, #tpu.memory_space<vmem>>, vector<1x1x256xi32>
    %3 = vector.shape_cast %2 : vector<1x1x256xi32> to vector<1x256xi32>
    %c0_i32 = arith.constant 0 : i32
    %4 = arith.cmpi eq, %arg0, %c0_i32 : i32
    %c0_i32_5 = arith.constant 0 : i32
    %5 = arith.cmpi eq, %arg1, %c0_i32_5 : i32
    %6 = arith.andi %4, %5 : i1
    %7 = arith.extui %6 : i1 to i32
    %c0_i32_6 = arith.constant 0 : i32
    %8 = arith.cmpi ne, %7, %c0_i32_6 : i32
    scf.if %8 {
      %cst_18 = arith.constant 0.000000e+00 : f32
      %40 = vector.broadcast %cst_18 : f32 to vector<1x256xf32>
      %c0_19 = arith.constant 0 : index
      %c0_20 = arith.constant 0 : index
      %41 = vector.load %arg5[%c0_19, %c0_20] : memref<1x256xf32, #tpu.memory_space<vmem>>, vector<1x256xf32>
      tpu.vector_store %arg5[%c0_19, %c0_20], %40 {strides = array<i32>} : memref<1x256xf32, #tpu.memory_space<vmem>>, vector<1x256xf32>,
      %cst_21 = arith.constant 0.000000e+00 : f32
      %42 = vector.broadcast %cst_21 : f32 to vector<1x1xf32>
      %c0_22 = arith.constant 0 : index
      %c0_23 = arith.constant 0 : index
      %43 = vector.load %arg4[%c0_22, %c0_23] : memref<1x1xf32, #tpu.memory_space<vmem>>, vector<1x1xf32>
      tpu.vector_store %arg4[%c0_22, %c0_23], %42 {strides = array<i32>} : memref<1x1xf32, #tpu.memory_space<vmem>>, vector<1x1xf32>,
    } else {
    }
    %cst = arith.constant dense<0xFF800000> : vector<256xf32>
    %9 = vector.multi_reduction <maximumf>, %1, %cst [0] : vector<4x256xf32> to vector<256xf32>
    %10 = vector.shape_cast %9 : vector<256xf32> to vector<1x256xf32>
    %11 = vector.broadcast %10 : vector<1x256xf32> to vector<4x256xf32>
    %12 = arith.subf %1, %11 : vector<4x256xf32>
    %13 = math.exp %12 : vector<4x256xf32>
    %cst_7 = arith.constant dense<0.000000e+00> : vector<256xf32>
    %14 = vector.multi_reduction <add>, %13, %cst_7 [0] : vector<4x256xf32> to vector<256xf32>
    %15 = vector.shape_cast %14 : vector<256xf32> to vector<1x256xf32>
    %16 = math.log %15 : vector<1x256xf32>
    %17 = tpu.iota {dimensions = array<i32: 0>} : vector<4x256xi32>
    %18 = vector.broadcast %3 : vector<1x256xi32> to vector<4x256xi32>
    %19 = arith.cmpi eq, %17, %18 : vector<4x256xi32>
    %cst_8 = arith.constant 0.000000e+00 : f32
    %20 = vector.broadcast %cst_8 : f32 to vector<4x256xf32>
    %21 = arith.select %19, %12, %20 : vector<4x256xi1>, vector<4x256xf32>
    %cst_9 = arith.constant dense<0.000000e+00> : vector<256xf32>
    %22 = vector.multi_reduction <add>, %21, %cst_9 [0] : vector<4x256xf32> to vector<256xf32>
    %23 = vector.shape_cast %22 : vector<256xf32> to vector<1x256xf32>
    %24 = arith.subf %23, %16 : vector<1x256xf32>
    %25 = math.exp %24 : vector<1x256xf32>
    %cst_10 = arith.constant 1.000000e+00 : f32
    %26 = vector.broadcast %cst_10 : f32 to vector<1x256xf32>
    %27 = arith.subf %26, %25 : vector<1x256xf32>
    %28 = arith.mulf %27, %27 : vector<1x256xf32>
    %cst_11 = arith.constant 0.000000e+00 : f32
    %29 = vector.broadcast %cst_11 : f32 to vector<1x256xf32>
    %30 = arith.subf %29, %28 : vector<1x256xf32>
    %31 = arith.mulf %30, %24 : vector<1x256xf32>
    %c0_12 = arith.constant 0 : index
    %c0_13 = arith.constant 0 : index
    %32 = vector.load %arg5[%c0_12, %c0_13] : memref<1x256xf32, #tpu.memory_space<vmem>>, vector<1x256xf32>
    %33 = arith.addf %32, %31 : vector<1x256xf32>
    %c0_14 = arith.constant 0 : index
    %c0_15 = arith.constant 0 : index
    %34 = vector.load %arg5[%c0_14, %c0_15] : memref<1x256xf32, #tpu.memory_space<vmem>>, vector<1x256xf32>
    tpu.vector_store %arg5[%c0_14, %c0_15], %33 {strides = array<i32>} : memref<1x256xf32, #tpu.memory_space<vmem>>, vector<1x256xf32>,
    %c1_i32 = arith.constant 1 : i32
    %35 = arith.cmpi eq, %arg0, %c1_i32 : i32
    %c0_i32_16 = arith.constant 0 : i32
    %36 = arith.cmpi eq, %arg1, %c0_i32_16 : i32
    %37 = arith.andi %35, %36 : i1
    %38 = arith.extui %37 : i1 to i32
    %c0_i32_17 = arith.constant 0 : i32
    %39 = arith.cmpi ne, %38, %c0_i32_17 : i32
    scf.if %39 {
      %c0_18 = arith.constant 0 : index
      %c0_19 = arith.constant 0 : index
      %40 = vector.load %arg5[%c0_18, %c0_19] : memref<1x256xf32, #tpu.memory_space<vmem>>, vector<1x256xf32>
      %41 = vector.shape_cast %40 : vector<1x256xf32> to vector<1x1x256xf32>
      %cst_20 = arith.constant dense<0.000000e+00> : vector<1xf32>
      %42 = vector.multi_reduction <add>, %41, %cst_20 [1, 2] : vector<1x1x256xf32> to vector<1xf32>
      %43 = vector.shape_cast %42 : vector<1xf32> to vector<1x1x1xf32>
      %44 = vector.extract %43[0, 0, 0] : f32 from vector<1x1x1xf32>
      %45 = vector.broadcast %44 : f32 to vector<1x1xf32>
      %cst_21 = arith.constant 5.120000e+02 : f32
      %46 = vector.broadcast %cst_21 : f32 to vector<1x1xf32>
      %47 = arith.divf %45, %46 : vector<1x1xf32>
      %c0_22 = arith.constant 0 : index
      %c0_23 = arith.constant 0 : index
      %48 = vector.load %arg4[%c0_22, %c0_23] : memref<1x1xf32, #tpu.memory_space<vmem>>, vector<1x1xf32>
      tpu.vector_store %arg4[%c0_22, %c0_23], %47 {strides = array<i32>} : memref<1x1xf32, #tpu.memory_space<vmem>>, vector<1x1xf32>,
    } else {
    }
    return
  }
  func.func @transform_0(%arg0: i32, %arg1: i32) -> (i32, i32, i32) {
    %c0_i32 = arith.constant 0 : i32
    %c0_i32_0 = arith.constant 0 : i32
    return %arg0, %c0_i32, %arg1 : i32, i32, i32
  }
  func.func @transform_1(%arg0: i32, %arg1: i32) -> (i32, i32, i32) {
    %c0_i32 = arith.constant 0 : i32
    %c0_i32_0 = arith.constant 0 : i32
    return %arg0, %c0_i32, %arg1 : i32, i32, i32
  }
  func.func @transform_2(%arg0: i32, %arg1: i32) -> (i32, i32) {
    %c0_i32 = arith.constant 0 : i32
    %c0_i32_0 = arith.constant 0 : i32
    %c0_i32_1 = arith.constant 0 : i32
    return %c0_i32, %c0_i32_0 : i32, i32
  }
}

</mosaic_0001>

<bundles_post_ra>
// kernel: tpu_custom_call.1
= control target key start
LH: loop header
LB: loop body
LE: loop exit
PB: predicated region body
PF: predicated region fallthrough
CT: control target
= control target key end

     0   :  { %7 = vsyncpa [#allocation4], 0  ;;  %s956_s0 = inlined_call_operand.hbm [shape: f32[2,4,256], index: 0, kind: input, shape index: {}]   ;;  %s957_s1 = inlined_call_operand.hbm [shape: s32[2,1,256], index: 1, kind: input, shape index: {}]   ;;  %s958_s2 = inlined_call_operand.hbm [shape: f32[1,1], index: 2, kind: output, shape index: {}]  }
   0x1   :  { %9 = vsyncpa [#allocation4 + $0x1], 0 }
   0x2   :  { %10 = vsyncpa [#allocation7], 0 }
   0x3   :  { %12 = vsyncpa [#allocation7 + $0x1], 0 }
   0x4   :  { %13 = vsyncpa [#allocation5], 0  ;;  %s738_s9 = smov 0   ;;  %s740_s10 = smov 0  }
   0x5   :  { %s742_s11 = smov 0   ;;  %s744_s12 = smov 0  }
   0x6   :  { %s746_s13 = smov 0   ;;  %s748_s14 = smov 0  }
   0x7 LB: > { %s469_s15 = sadd.s32 4294967295, %s716_s14   ;;  %s31_s16 = sadd.s32 1, %s712_s13  ;;  %s716_s14 = sphi %s748_s14, %s19_s14   ;;  %s712_s13 = sphi %s746_s13, %s973_s13   ;;  %s708_s12 = sphi %s744_s12, %s972_s12   ;;  %s704_s11 = sphi %s742_s11, %s971_s11   ;;  %s700_s10 = sphi %s740_s10, %s970_s10   ;;  %s696_s9 = sphi %s738_s9, %s969_s9  }
   0x8   : > { %p33_p0 = scmp.ge.s32.totalorder %s31_s16, 2  ;;  %s40_s17 = sadd.s32 1, %s704_s11 }
   0x9   : > { %p47_p1 = scmp.ne.s32.totalorder %s704_s11, %s700_s10  ;;  %p48_p2 = scmp.eq.s32.totalorder %s716_s14, 0 }
   0xa   : > { %s975_s16 = smov (%p33_p0, %s31_s16), 0  ;;  %p53_p4 = scmp.ne.s32.totalorder %s700_s10, %s696_s9 }
   0xb   : > { %p774_p3 = por %p48_p2, %p47_p1  ;;  %s35_s19 = ssub.s32 %s712_s13, %s975_s16 }
   0xc   : > { %p54_p5 = scmp.eq.s32.totalorder %s469_s15, 0  ;;  %p38_p6 = scmp.eq.s32.totalorder %s35_s19, 0 }
   0xd   : > { %p508_p8 = scmp.lt.s32.totalorder %s716_s14, 2  ;;  %s792_s22 = sand.u32 1, %s704_s11  }
   0xe   : > { %p783_p7 = por %p54_p5, %p53_p4  ;;  %s487_s23 = sshll.u32 %s712_s13, 7 }
   0xf   : > { %s789_s21 = scalar_select %p38_p6, %s704_s11, %s40_s17  }
  0x10   : > { %s961_s20 = scalar_select %p783_p7, 1, 0 }
  0x11   : > { %s472_s24 = sshll.u32 %s792_s22, 3  ;;  %s799_s27 = scalar_lea.hbm %s956_s0, %s487_s23 }
  0x12   : > { %s130_s28 = scalar_lea.vmem [#allocation3], %s472_s24  ;;  %p803_p9 = pnand %p508_p8, %p774_p3 }
  0x13   : > { %s140_s29 = sshll.u32 %s130_s28, 4  ;;  %s127_s3 = scalar_lea.sflag [#allocation4], %s792_s22  ;;  %s807_s29 = int_to_ptr.vmem [resolvable:$true] %s140_s29 }
  0x14   : > { %s572_s4 = scalar_lea.hbm %s799_s27, 128  ;;  %p574_p13 = pneg %p803_p9 }
  0x15   : > { %p573_p12 = scmp.ne.s32.totalorder %s799_s27, %s572_s4  ;;  %s577_s7 = scalar_lea.hbm %s956_s0, 256 }
  0x16   : > { %p578_p2 = scmp.lt.u32.totalorder %s799_s27, %s956_s0  ;;  %p579_p3 = scmp.lt.u32.totalorder %s577_s7, %s572_s4 }
  0x17   : > { %p575_p0 = pnand %p574_p13, %p573_p12  ;;  %p581_p5 = scmp.lt.u32.totalorder %s572_s4, %s799_s27 }
  0x18   : > { %p580_p4 = por %p579_p3, %p578_p2 }
  0x19   : > { %p576_p1 = pneg %p575_p0 }
  0x1a   : > { %p582_p6 = por %p581_p5, %p580_p4 }
  0x1c   : > { %p583_p8 = pnand %p582_p6, %p576_p1 }
  0x1e   : > { %586 = shalt.err (!%p583_p8)
}
  0x1f   : > { %s587_s17 = scalar_lea.vmem %s807_s29, 128  ;;  %s718_s18 = smov [#allocation3]  }
  0x20   : > { %p588_p12 = scmp.ne.s32.totalorder %s807_s29, %s587_s17  ;;  %s592_s19 = sshll.u32 %s718_s18, 4  ;;  %s593_s19 = int_to_ptr.vmem [resolvable:$false] %s592_s19 }
  0x21   : > { %s594_s23 = scalar_lea.vmem %s593_s19, 256  ;;  %p595_p11 = scmp.lt.s32.totalorder %s807_s29, %s593_s19 }
  0x22   : > { %p590_p0 = pnand %p588_p12, %p574_p13  ;;  %p596_p2 = scmp.lt.s32.totalorder %s594_s23, %s587_s17 }
  0x24   : > { %p591_p10 = pneg %p590_p0  ;;  %p597_p3 = por %p596_p2, %p595_p11 }
  0x26   : > { %p598_p4 = pnand %p597_p3, %p591_p10 }
  0x28   : > { %601 = shalt.err (!%p598_p4)
}
  0x29   : > { %504 = dma.hbm_to_vmem [thread:$0]  (!%p803_p9), %s799_s27, 128, %s807_s29, %s127_s3  }
  0x2a   : > { %p963_p1 = scmp.lt.s32.totalorder %s716_s14, 3  ;;  %p964_p5 = scmp.ge.s32.totalorder %s716_s14, 1 }
  0x2b   : > { %s475_s25 = sshll.u32 %s792_s22, 1  ;;  %s488_s26 = sshll.u32 %s712_s13, 5 }
  0x2c   : > { %p841_p6 = pnand %p964_p5, %p963_p1  ;;  %s850_s5 = scalar_lea.hbm %s957_s1, %s488_s26 }
  0x2d   : > { %s151_s6 = scalar_lea.vmem [#allocation6], %s475_s25  ;;  %s148_s27 = scalar_lea.sflag [#allocation7], %s792_s22 }
  0x2e   : > { %s965_s24 = scalar_select %p841_p6, 1, 0 }
  0x2f   : > { %s161_s7 = sshll.u32 %s151_s6, 4  ;;  %s602_s29 = scalar_lea.hbm %s850_s5, 32  ;;  %s162_s7 = int_to_ptr.vmem [resolvable:$true] %s161_s7 }
  0x30   : > { %p603_p10 = scmp.ne.s32.totalorder %s850_s5, %s602_s29  ;;  %s607_s9 = scalar_lea.hbm %s957_s1, 64 }
  0x31   : > { %p608_p12 = scmp.lt.u32.totalorder %s850_s5, %s957_s1  ;;  %p609_p0 = scmp.lt.u32.totalorder %s607_s9, %s602_s29 }
  0x32   : > { %p605_p11 = pnand %p603_p10, %p574_p13  ;;  %p611_p3 = scmp.lt.u32.totalorder %s602_s29, %s850_s5 }
  0x33   : > { %p610_p2 = por %p609_p0, %p608_p12 }
  0x34   : > { %p606_p8 = pneg %p605_p11 }
  0x35   : > { %p612_p4 = por %p611_p3, %p610_p2 }
  0x37   : > { %p613_p1 = pnand %p612_p4, %p606_p8 }
  0x39   : > { %616 = shalt.err (!%p613_p1)
}
  0x3a   : > { %s617_s22 = scalar_lea.vmem %s162_s7, 32  ;;  %s719_s19 = smov [#allocation6]  }
  0x3b   : > { %p618_p5 = scmp.ne.s32.totalorder %s162_s7, %s617_s22  ;;  %s622_s23 = sshll.u32 %s719_s19, 4  ;;  %s623_s23 = int_to_ptr.vmem [resolvable:$false] %s622_s23 }
  0x3c   : > { %s624_s25 = scalar_lea.vmem %s623_s23, 64  ;;  %p625_p7 = scmp.lt.s32.totalorder %s162_s7, %s623_s23 }
  0x3d   : > { %p620_p10 = pnand %p618_p5, %p574_p13  ;;  %p626_p6 = scmp.lt.s32.totalorder %s624_s25, %s617_s22 }
  0x3f   : > { %p621_p11 = pneg %p620_p10  ;;  %p627_p0 = por %p626_p6, %p625_p7 }
  0x41   : > { %p628_p12 = pnand %p627_p0, %p621_p11 }
  0x43   : > { %631 = shalt.err (!%p628_p12)
}
  0x44   : > { %507 = dma.hbm_to_vmem [thread:$0]  (!%p803_p9), %s850_s5, 32, %s162_s7, %s148_s27  }
  0x45   : > { %p966_p8 = scmp.ne.s32.totalorder %s965_s24, 0 }
  0x46   : > { %s172_s26 = sand.u32 (!%p966_p8), 1, %s700_s10   ;;  %p967_p13 = scmp.ne.s32.totalorder (!%p966_p8), %s961_s20, 0 }
  0x47   : > { %170 = sbr.rel (%p966_p8) target bundleno = 428 (0x1ac), region = 28  ;;  %s479_s28 = sshll.u32 (!%p966_p8), %s172_s26, 3 }
  0x48   : > { %s173_s4 = scalar_lea.sflag (!%p966_p8), [#allocation4], %s172_s26  ;;  %s176_s6 = scalar_lea.vmem (!%p966_p8), [#allocation3], %s479_s28 }
  0x4e   : > { %683 = dma.done.wait (%p967_p13), %s173_s4, 128  }
  0x4f   : > { %685 = vsyncadd (%p967_p13), %s173_s4, 4294967168  ;;  %s480_s29 = sshll.u32 %s172_s26, 1  ;;  %s182_s3 = scalar_lea.sflag [#allocation7], %s172_s26 }
  0x50   : > { %s185_s30 = scalar_lea.vmem [#allocation6], %s480_s29 }
  0x51   : > { %687 = dma.done.wait (%p967_p13), %s182_s3, 32  }
  0x52   : > { %689 = vsyncadd (%p967_p13), %s182_s3, 4294967264  ;;  %p210_p7 = scmp.eq.s32.totalorder %s708_s12, 0  ;;  %v208_v0 = vld [vmem:[%s176_s6] sm:$0xff]  ;;  %v209_v1 = vld [vmem:[%s185_s30] sm:$0x3] }
  0x53   : > { %v216_v2 = vlaneseq (%p210_p7)  ;;  %vm221_vm0 = vcmask (%p210_p7), 0   ;;  %v720_v3 = vmov (%p210_p7), 0.0  }
  0x54   : > { %215 = sbr.rel (!%p210_p7) target bundleno = 91 (0x5b), region = 40  ;;  %222 = vst.msk [vmem:[#allocation8] sm:$0x1] (%p210_p7), %vm221_vm0, %v720_v3 }
  0x55   : > { %vm218_vm1 = vcmp.lt.s32.totalorder (%p210_p7), %v216_v2, 256 }
  0x56   : > { %220 = vst.msk [vmem:[#allocation2] sm:$0x3] (%p210_p7), %vm218_vm1, %v720_v3 }
  0x5b PF: > { %v224_v4 = vcombine.high %v208_v0, %v208_v0  ;;  %vm226_vm2 = vcmask 1043456   ;;  %p339_p9 = scmp.eq.s32.totalorder %s708_s12, 1  ;;  %v269_v15 = vlaneseq }
  0x5c   : > { %v227_v5 = vsel %vm226_vm2, %v208_v0, -inf  ;;  %vm356_vm6 = vcmask (%p339_p9), 1040384   ;;  %vm372_vm7 = vcmask (%p339_p9), 0  }
  0x5d   : > { %v228_v6 = vrot.slane %v227_v5, 4  ;;  %v234_v7 = vsel %vm226_vm2, %v224_v4, -inf  ;;  %v888_v20 = vshrl.u32 %v269_v15, 7  ;;  %vm336_vm5 = vcmp.lt.s32.totalorder %v269_v15, 256 }
  0x5e   : > { %v235_v8 = vrot.slane %v234_v7, 4 }
  0x5f   : > { %v229_v9 = vmax.f32 %v227_v5, %v228_v6  ;;  %v273_v23 = vsub.s32 0, %v888_v20  ;;  %v277_v25 = vsub.s32 1, %v888_v20 }
  0x60   : > { %v236_v10 = vmax.f32 %v234_v7, %v235_v8  ;;  %v721_v7 = vmov 1966171168  }
  0x61   : > { %v230_v11 = vrot.slane %v229_v9, 2  ;;  %v274_v26 = vrot.slane %v209_v1, %v273_v23  ;;  %v278_v27 = vrot.slane %v209_v1, %v277_v25  ;;  %v319_v8 = vunpack.c.l.s4 %v721_v7 }
  0x62   : > { %v237_v12 = vrot.slane %v236_v10, 2 }
  0x63   : > { %v231_v13 = vmax.f32 %v229_v9, %v230_v11  ;;  %vm279_vm3 = vcmp.eq.s32.totalorder %v888_v20, %v274_v26  ;;  %vm280_vm4 = vcmp.eq.s32.totalorder %v888_v20, %v278_v27 }
  0x64   : > { %v238_v14 = vmax.f32 %v236_v10, %v237_v12 }
  0x65   : > { %v232_v16 = vrot.slane %v231_v13, 1 }
  0x66   : > { %v239_v17 = vrot.slane %v238_v14, 1 }
  0x67   : > { %v233_v18 = vmax.f32 %v231_v13, %v232_v16 }
  0x68   : > { %v240_v19 = vmax.f32 %v238_v14, %v239_v17  ;;  %v320_v14 = vunpack.c.0.s8 %v319_v8 }
  0x6a   : > { %v243_v21 = vcombine.low %v233_v18, %v240_v19  ;;  %v323_v19 = vsub.s32 %v320_v14, %v888_v20 }
  0x6c   : > { %v245_v22 = vsub.f32 %v208_v0, %v243_v21 }
  0x6e   : > { %v246_v24 = vmul.f32 1.442695, %v245_v22  ;;  %v282_v28 = vcombine.high %v245_v22, %v245_v22  ;;  %v284_v29 = vsel %vm279_vm3, %v245_v22, 0.0 }
  0x6f   : > { %v286_v32 = vsel %vm226_vm2, %v284_v29, 0.0 }
  0x70   : > { %562 = vpow2.f32 %v246_v24  ;;  %v285_v30 = vsel %vm280_vm4, %v282_v28, 0.0  ;;  %v287_v38 = vrot.slane %v286_v32, 4  ;;  %v314_v24 = vld [vmem:[#allocation2] sm:$0x3] }
  0x71   : > { %v293_v36 = vsel %vm226_vm2, %v285_v30, 0.0 }
  0x72   : > { %v294_v41 = vrot.slane %v293_v36, 4  ;;  %v288_v44 = vadd.f32 %v287_v38, %v286_v32 }
  0x74   : > { %v295_v47 = vadd.f32 %v294_v41, %v293_v36  ;;  %v289_v50 = vrot.slane %v288_v44, 2 }
  0x76   : > { %v296_v53 = vrot.slane %v295_v47, 2  ;;  %v290_v55 = vadd.f32 %v289_v50, %v288_v44 }
  0x78   : > { %v297_v56 = vadd.f32 %v296_v53, %v295_v47  ;;  %v291_v57 = vrot.slane %v290_v55, 1 }
  0x7a   : > { %v563_v31 = vpop.eup %562  ;;  %v298_v58 = vrot.slane %v297_v56, 1  ;;  %v292_v59 = vadd.f32 %v291_v57, %v290_v55 }
  0x7b   : > { %v249_v33 = vcombine.high %v563_v31, %v563_v31  ;;  %v251_v34 = vsel %vm226_vm2, %v563_v31, 0.0 }
  0x7c   : > { %v252_v35 = vrot.slane %v251_v34, 4  ;;  %v299_v62 = vadd.f32 %v298_v58, %v297_v56 }
  0x7d   : > { %v258_v37 = vsel %vm226_vm2, %v249_v33, 0.0 }
  0x7e   : > { %v253_v39 = vadd.f32 %v252_v35, %v251_v34  ;;  %v259_v40 = vrot.slane %v258_v37, 4 }
  0x80   : > { %v254_v42 = vrot.slane %v253_v39, 2  ;;  %v260_v43 = vadd.f32 %v259_v40, %v258_v37 }
  0x82   : > { %v255_v45 = vadd.f32 %v254_v42, %v253_v39  ;;  %v261_v46 = vrot.slane %v260_v43, 2 }
  0x84   : > { %v256_v48 = vrot.slane %v255_v45, 1  ;;  %v262_v49 = vadd.f32 %v261_v46, %v260_v43 }
  0x86   : > { %v257_v51 = vadd.f32 %v256_v48, %v255_v45  ;;  %v263_v52 = vrot.slane %v262_v49, 1 }
  0x88   : > { %v264_v54 = vadd.f32 %v263_v52, %v262_v49  ;;  %564 = vlog2.f32 %v257_v51 }
  0x8a   : > { %566 = vlog2.f32 %v264_v54 }
  0x92   : > { %v565_v60 = vpop.eup %564 }
  0x93   : > { %v266_v61 = vmul.f32 0.6931472, %v565_v60 }
  0x94   : > { %v567_v63 = vpop.eup %566 }
  0x95   : > { %v268_v0 = vmul.f32 0.6931472, %v567_v63  ;;  %v300_v1 = vsub.f32 %v292_v59, %v266_v61 }
  0x97   : > { %v301_v2 = vsub.f32 %v299_v62, %v268_v0  ;;  %v302_v3 = vmul.f32 1.442695, %v300_v1 }
  0x99   : > { %568 = vpow2.f32 %v302_v3  ;;  %v304_v4 = vmul.f32 1.442695, %v301_v2 }
  0x9b   : > { %570 = vpow2.f32 %v304_v4 }
  0xa3   : > { %v569_v5 = vpop.eup %568 }
  0xa4   : > { %v306_v6 = vsub.f32 1.0, %v569_v5 }
  0xa5   : > { %v571_v9 = vpop.eup %570 }
  0xa6   : > { %v307_v10 = vsub.f32 1.0, %v571_v9  ;;  %v308_v11 = vmul.f32 %v306_v6, %v306_v6 }
  0xa8   : > { %v309_v12 = vmul.f32 %v307_v10, %v307_v10  ;;  %v310_v13 = vsub.f32 0.0, %v308_v11 }
  0xaa   : > { %v311_v16 = vsub.f32 0.0, %v309_v12  ;;  %v312_v17 = vmul.f32 %v310_v13, %v300_v1 }
  0xac   : > { %v313_v18 = vmul.f32 %v311_v16, %v301_v2 }
  0xae   : > { %v317_v21 = vcombine.low %v312_v17, %v313_v18 }
  0xb0   : > { %v324_v22 = vrot.slane %v317_v21, %v323_v19  ;;  %343 = sbr.rel (!%p339_p9) target bundleno = 403 (0x193), region = 44 }
  0xb2   : > { %v331_v26 = vrot.slane %v324_v22, %v323_v19 }
  0xb4   : > { %v333_v27 = vadd.f32 %v331_v26, %v314_v24 }
  0xb6   : > { %338 = vst.msk [vmem:[#allocation2] sm:$0x3] %vm336_vm5, %v333_v27 }
  0xbd   : > { %v344_v28 = vld [vmem:[#allocation2] sm:$0x3] }
  0xbe   : > { %v349_v29 = vrot.slane %v344_v28, %v273_v23  ;;  %v353_v30 = vrot.slane %v344_v28, %v277_v25 }
  0xc0   : > { %v357_v31 = vsel %vm356_vm6, %v349_v29, 0.0  ;;  %v358_v32 = vsel %vm356_vm6, %v353_v30, 0.0 }
  0xc1   : > { %v359_v33 = vadd.f32 %v358_v32, %v357_v31 }
  0xc3   : > { %360 = vadd.xlane.f32.xlu0 %v359_v33 }
 0x150   : > { %v361_v34 = vpop.xlane.xlu0 %360 }
 0x151   : > { %v362_v35 = vrot.slane %v361_v34, 4 }
 0x153   : > { %v363_v15 = vadd.f32 %v362_v35, %v361_v34 }
 0x155   : > { %v364_v36 = vrot.slane %v363_v15, 2 }
 0x157   : > { %v365_v37 = vadd.f32 %v364_v36, %v363_v15 }
 0x159   : > { %v366_v38 = vrot.slane %v365_v37, 1 }
 0x15b   : > { %v367_v39 = vadd.f32 %v366_v38, %v365_v37 }
 0x15d   : > { %491 = vpush %v367_v39 }
 0x18e   : > { %s492_s12 = spop %491 }
 0x18f   : > { %v369_v40 = vstv %s492_s12 }
 0x190   : > { %v371_v41 = vmul.f32 0.001953125, %v369_v40 }
 0x192   : > { %373 = vst.msk [vmem:[#allocation8] sm:$0x1] %vm372_vm7, %v371_v41 }
 0x193 PF: > { %p912_p6 = scmp.eq.s32.totalorder %s469_s15, 1  ;;  %s722_s24 = smov [#allocation8]  }
 0x194   : > { %s381_s5 = sshll.u32 %s722_s24, 4  ;;  %s382_s5 = int_to_ptr.vmem [resolvable:$true] %s381_s5 }
 0x195   : > { %s632_s7 = scalar_lea.vmem %s382_s5, 16  ;;  %s638_s27 = scalar_lea.vmem %s382_s5, 32 }
 0x196   : > { %p633_p2 = scmp.ne.s32.totalorder %s382_s5, %s632_s7  ;;  %p639_p1 = scmp.lt.s32.totalorder %s382_s5, %s382_s5 }
 0x197   : > { %p640_p5 = scmp.lt.s32.totalorder %s638_s27, %s632_s7 }
 0x198   : > { %p634_p3 = pnand %p633_p2, %p912_p6 }
 0x199   : > { %p641_p10 = por %p640_p5, %p639_p1 }
 0x19a   : > { %p635_p4 = pneg %p634_p3 }
 0x19c   : > { %p642_p11 = pnand %p641_p10, %p635_p4 }
 0x19e   : > { %645 = shalt.err (!%p642_p11)
}
 0x19f   : > { %s646_s9 = scalar_lea.hbm %s958_s2, 16 }
 0x1a0   : > { %p647_p0 = scmp.ne.s32.totalorder %s958_s2, %s646_s9  ;;  %p652_p13 = scmp.lt.u32.totalorder %s646_s9, %s958_s2 }
 0x1a2   : > { %p648_p12 = pnand %p647_p0, %p912_p6 }
 0x1a4   : > { %p649_p8 = pneg %p648_p12 }
 0x1a6   : > { %p654_p7 = pnand %p652_p13, %p649_p8 }
 0x1a8   : > { %657 = shalt.err (!%p654_p7)
}
 0x1a9   : > { %498 = dma.vmem_to_hbm [thread:$0]  (%p912_p6), %s382_s5, 16, %s958_s2, [#allocation5]  }
 0x1aa   : > { %691 = dma.done.wait (%p912_p6), [#allocation5], 16  }
 0x1ab   : > { %693 = vsyncadd (%p912_p6), [#allocation5], 4294967280 }
 0x1ac PF: > { %s19_s14 = sadd.s32 1, %s716_s14   ;;  %s969_s9 = smov %s700_s10 }
 0x1ad   : > { %p16_p9 = scmp.ge.s32.totalorder %s19_s14, 4   ;;  %s970_s10 = smov %s704_s11 }
 0x1ae   : > { %s971_s11 = smov %s789_s21  ;;  %s972_s12 = smov %s712_s13 }
 0x1af   : > { %s973_s13 = smov %s975_s16  ;;  %18 = sbr.rel (!%p16_p9) target bundleno = 7 (0x7), region = 86 }
 0x1b6   :  { %394 = vsyncpa [#allocation4], 1 }
 0x1b7   :  { %396 = vsyncpa [#allocation4 + $0x1], 1 }
 0x1b8   :  { %397 = vsyncpa [#allocation7], 1 }
 0x1b9   :  { %399 = vsyncpa [#allocation7 + $0x1], 1 }
 0x1ba   :  { %400 = vsyncpa [#allocation5], 1 }
 0x1bb   :  { %402 = vsyncpa [#allocation5 + $0x1], 1 }

</bundles_post_ra>
